<compile_context>
chip_gen: v7x
topology: tpu7x:2x2x1
jax: 0.10.0
libtpu: 0.0.40
codegen_flags: <defaults>
</compile_context>

<pallas_src>
import math
import functools

import numpy as np
import jax
import jax.numpy as jnp
from jax.experimental import pallas as pl
from jax.experimental.pallas import tpu as pltpu


def _pe_concat_kernel(x_ref, tail_ref, o_ref, *, E):
    # x_ref   : (TS, E)            one (seq-tile, batch-row) slice of the input
    # tail_ref: (TS, D_TAIL)       precomputed [pe | in_out] tail (batch-invariant)
    # o_ref   : (TS, E + D_TAIL)
    # Two static-slice stores; lane-dense (unmasked vst) when E % 128 == 0.
    o_ref[:, :E] = x_ref[...]
    o_ref[:, E:] = tail_ref[...]


def make_sin_pe_table(max_len: int, d_model: int) -> jnp.ndarray:
    position = np.arange(max_len, dtype=np.float32)[:, None]                  # (max_len, 1)
    div_term = np.exp(np.arange(0, d_model, 2, dtype=np.float32)
                      * (-math.log(10000.0) / d_model))                       # (d_model/2,)
    pe = np.zeros((max_len, d_model), dtype=np.float32)
    pe[:, 0::2] = np.sin(position * div_term)
    pe[:, 1::2] = np.cos(position * div_term)
    return jnp.asarray(pe)                                                    # (max_len, d_model)


def _sublane_multiple(dtype) -> int:
    # Native sublane packing: 8 rows for 4-byte, 16 for 2-byte, 32 for 1-byte.
    return max(8, 32 // jnp.dtype(dtype).itemsize)


def _vmem_params():
    """Generation-aware (tile budget, scoped-VMEM limit ceiling) in bytes."""
    cap = 64 << 20  # conservative default = v7x per-TC physical VMEM
    try:
        info = pltpu.get_tpu_info()
        cap = int(getattr(info, "vmem_capacity_bytes", cap))
    except Exception:
        pass
    budget = max(8 << 20, cap // 3)            # ~42 MiB on 128 MiB chips, ~21 MiB on v7x
    limit_cap = max(16 << 20, cap - (16 << 20))  # always >=16 MiB headroom below physical
    return budget, limit_cap


def _pick_seq_tile(S, E, tail_dim, E_out, itemsize, sub, vmem_budget):
    """Largest multiple-of-`sub` divisor of S whose double-buffered tiles fit
    the budget; falls back to full-extent S if no such divisor exists."""
    divisors = [t for t in range(sub, S + 1, sub) if S % t == 0]
    if not divisors:
        return S
    best = divisors[0]
    for t in divisors:
        if 2 * t * (E + tail_dim + E_out) * itemsize <= vmem_budget:
            best = t
    return best


def positional_encoding_forward(x, pe_table, in_out_weight, *, seq_tile=None):
    """x: (B, S, E).  Returns (B, S, E + d_model + 256), dtype of x."""
    B, S, E = x.shape
    max_len, d_model = pe_table.shape
    io_dim = in_out_weight.shape[1]
    tail_dim = d_model + io_dim
    E_out = E + tail_dim

    if S > max_len:
        raise ValueError(f"sequence length {S} exceeds PE table max_len {max_len}")
    if S % 2 != 0:
        # Matches the PyTorch torch.tensor([0,1]).repeat(S//2) semantics,
        # which only produces a length-S index vector for even S.
        raise ValueError(f"sequence length must be even, got {S}")

    # Hoisted, batch-invariant tail: [pe[:S] | in_out([0,1,0,1,...])].
    # (Cast to x.dtype: for bf16/fp8 inputs this is lower precision than the
    # PyTorch fp32 pe buffer -- acceptable per module usage, fp32 demo exact.)
    idx = jnp.tile(jnp.array([0, 1], dtype=jnp.int32), S // 2)                 # (S,)
    tail = jnp.concatenate([pe_table[:S, :], in_out_weight[idx]], axis=-1)
    tail = tail.astype(x.dtype)                                                # (S, tail_dim)

    itemsize = jnp.dtype(x.dtype).itemsize
    sub = _sublane_multiple(x.dtype)
    vmem_budget, vmem_limit_cap = _vmem_params()

    TS = seq_tile if seq_tile is not None else _pick_seq_tile(
        S, E, tail_dim, E_out, itemsize, sub, vmem_budget)
    if S % TS != 0:
        raise ValueError(f"seq_tile {TS} must divide S {S}")
    n_s = S // TS

    step_bytes = TS * (E + tail_dim + E_out) * itemsize
    vmem_limit = int(min(vmem_limit_cap, max(4 << 20, 4 * step_bytes)))

    kernel = functools.partial(_pe_concat_kernel, E=E)

    return pl.pallas_call(
        kernel,
        out_shape=jax.ShapeDtypeStruct((B, S, E_out), x.dtype),
        grid_spec=pltpu.PrefetchScalarGridSpec(
            num_scalar_prefetch=0,
            # Batch is the innermost grid axis: the tail's block index (s, 0)
            # is constant across it, so Pallas re-uses the resident tail tile
            # instead of re-DMAing it B times per seq tile.
            grid=(n_s, B),
            in_specs=[
                pl.BlockSpec((pl.Squeezed(), TS, E), lambda s, b: (b, s, 0)),
                pl.BlockSpec((TS, tail_dim), lambda s, b: (s, 0)),
            ],
            out_specs=pl.BlockSpec((pl.Squeezed(), TS, E_out), lambda s, b: (b, s, 0)),
        ),
        compiler_params=pltpu.CompilerParams(
            dimension_semantics=("parallel", "parallel"),
            vmem_limit_bytes=vmem_limit),
    )(x, tail)


def reference_forward(x, pe_table, in_out_weight):
    B, S, E = x.shape
    pe = jnp.broadcast_to(pe_table[:S, :][None], (B, S, pe_table.shape[1]))
    idx = jnp.tile(jnp.array([0, 1], dtype=jnp.int32), S // 2)
    io = jnp.broadcast_to(in_out_weight[idx][None], (B, S, in_out_weight.shape[1]))
    return jnp.concatenate([x, pe.astype(x.dtype), io.astype(x.dtype)], axis=-1)


if __name__ == "__main__":
    B, S, E = 2, 8, 128         # batch, seq (even), embedding dim (128-aligned split)
    d_model = 16                # d_model of the sin/cos PE
    max_len = 64                # synthetic table size (>= S)

    key = jax.random.PRNGKey(0)
    kx, kw = jax.random.split(key)
    x = jax.random.normal(kx, (B, S, E), dtype=jnp.float32)

    pe_table = make_sin_pe_table(max_len, d_model)                      # buffer 'pe'
    in_out_weight = jax.random.normal(kw, (2, 256), dtype=jnp.float32)  # nn.Embedding(2, 256)
    # (wpe = nn.Embedding(max_len, d_model) is unused on the default 'sin' path.)

    out = positional_encoding_forward(x, pe_table, in_out_weight)
    out = jax.block_until_ready(out)

    ref = reference_forward(x, pe_table, in_out_weight)
    assert out.shape == (B, S, E + d_model + 256), out.shape
    np.testing.assert_allclose(np.asarray(out), np.asarray(ref), rtol=1e-6, atol=1e-6)

    print("KERNEL_OK")
</pallas_src>

<mosaic_0001>
module attributes {stable_mosaic.version = 11 : i64} {
  func.func @_pe_concat_kernel(%arg0: i32, %arg1: i32, %arg2: memref<1x8x128xf32, #tpu.memory_space<vmem>>, %arg3: memref<8x272xf32, #tpu.memory_space<vmem>>, %arg4: memref<1x8x400xf32, #tpu.memory_space<vmem>>) attributes {dimension_semantics = [#tpu.dimension_semantics<parallel>, #tpu.dimension_semantics<parallel>], iteration_bounds = array<i64: 1, 2>, scalar_prefetch = 0 : i64, scratch_operands = 0 : i64, tpu.core_type = #tpu.core_type<tc>, window_params = [{transform_indices = @transform_0, window_bounds = array<i64: 1, 8, 128>}, {transform_indices = @transform_1, window_bounds = array<i64: 8, 272>}, {transform_indices = @transform_2, window_bounds = array<i64: 1, 8, 400>}]} {
    %c0 = arith.constant 0 : index
    %c0_0 = arith.constant 0 : index
    %c0_1 = arith.constant 0 : index
    %0 = vector.load %arg2[%c0, %c0_0, %c0_1] : memref<1x8x128xf32, #tpu.memory_space<vmem>>, vector<1x8x128xf32>
    %1 = vector.shape_cast %0 : vector<1x8x128xf32> to vector<8x128xf32>
    %c0_2 = arith.constant 0 : index
    %c0_3 = arith.constant 0 : index
    %c0_4 = arith.constant 0 : index
    %2 = vector.load %arg4[%c0_2, %c0_3, %c0_4] : memref<1x8x400xf32, #tpu.memory_space<vmem>>, vector<1x8x128xf32>
    %3 = vector.shape_cast %2 : vector<1x8x128xf32> to vector<8x128xf32>
    %4 = vector.shape_cast %1 : vector<8x128xf32> to vector<1x8x128xf32>
    tpu.vector_store %arg4[%c0_2, %c0_3, %c0_4], %4 {strides = array<i32>} : memref<1x8x400xf32, #tpu.memory_space<vmem>>, vector<1x8x128xf32>,
    %c0_5 = arith.constant 0 : index
    %c0_6 = arith.constant 0 : index
    %5 = vector.load %arg3[%c0_5, %c0_6] : memref<8x272xf32, #tpu.memory_space<vmem>>, vector<8x272xf32>
    %c0_7 = arith.constant 0 : index
    %c0_8 = arith.constant 0 : index
    %c128 = arith.constant 128 : index
    %6 = vector.load %arg4[%c0_7, %c0_8, %c128] : memref<1x8x400xf32, #tpu.memory_space<vmem>>, vector<1x8x272xf32>
    %7 = vector.shape_cast %6 : vector<1x8x272xf32> to vector<8x272xf32>
    %8 = vector.shape_cast %5 : vector<8x272xf32> to vector<1x8x272xf32>
    tpu.vector_store %arg4[%c0_7, %c0_8, %c128], %8 {strides = array<i32>} : memref<1x8x400xf32, #tpu.memory_space<vmem>>, vector<1x8x272xf32>,
    return
  }
  func.func @transform_0(%arg0: i32, %arg1: i32) -> (i32, i32, i32) {
    %c0_i32 = arith.constant 0 : i32
    %c0_i32_0 = arith.constant 0 : i32
    return %arg1, %arg0, %c0_i32 : i32, i32, i32
  }
  func.func @transform_1(%arg0: i32, %arg1: i32) -> (i32, i32) {
    %c0_i32 = arith.constant 0 : i32
    %c0_i32_0 = arith.constant 0 : i32
    return %arg0, %c0_i32 : i32, i32
  }
  func.func @transform_2(%arg0: i32, %arg1: i32) -> (i32, i32, i32) {
    %c0_i32 = arith.constant 0 : i32
    %c0_i32_0 = arith.constant 0 : i32
    return %arg1, %arg0, %c0_i32 : i32, i32, i32
  }
}

</mosaic_0001>

<bundles_post_ra>
// kernel: tpu_custom_call.1
= control target key start
LH: loop header
LB: loop body
LE: loop exit
PB: predicated region body
PF: predicated region fallthrough
CT: control target
= control target key end

     0   :  { %7 = vsyncpa [#allocation3], 0  ;;  %s788_s0 = inlined_call_operand.hbm [shape: f32[2,8,128], index: 0, kind: input, shape index: {}]   ;;  %s789_s1 = inlined_call_operand.hbm [shape: f32[8,272], index: 1, kind: input, shape index: {}]   ;;  %s790_s2 = inlined_call_operand.hbm [shape: f32[2,8,400], index: 2, kind: output, shape index: {}]  }
   0x1   :  { %9 = vsyncpa [#allocation3 + $0x1], 0 }
   0x2   :  { %10 = vsyncpa [#allocation6], 0 }
   0x3   :  { %11 = vsyncpa [#allocation4], 0 }
   0x4   :  { %13 = vsyncpa [#allocation4 + $0x1], 0  ;;  %s571_s9 = smov 0   ;;  %s573_s10 = smov 0  }
   0x5   :  { %s575_s11 = smov 0   ;;  %s577_s12 = smov 0  }
   0x6   :  { %s579_s13 = smov 0   ;;  %s581_s14 = smov 0  }
   0x7 LB: > { %s317_s15 = sadd.s32 4294967295, %s551_s14   ;;  %s318_s16 = sadd.s32 4294967294, %s551_s14   ;;  %s551_s14 = sphi %s581_s14, %s19_s14   ;;  %s547_s13 = sphi %s579_s13, %s815_s13   ;;  %s543_s12 = sphi %s577_s12, %s814_s12   ;;  %s539_s11 = sphi %s575_s11, %s813_s11   ;;  %s535_s10 = sphi %s573_s10, %s812_s10   ;;  %s531_s9 = sphi %s571_s9, %s811_s9  }
   0x8   : > { %p53_p0 = scmp.ne.s32.totalorder %s535_s10, %s531_s9  ;;  %p605_p1 = scmp.eq.s32.totalorder %s317_s15, 0 }
   0x9   : > { %p609_p2 = scmp.eq.s32.totalorder %s317_s15, 1  ;;  %p111_p3 = scmp.eq.s32.totalorder %s318_s16, 1 }
   0xa   : > { %s795_s17 = scalar_select %p605_p1, 1, 0 }
   0xb   : > { %s796_s18 = scalar_select %p609_p2, 1, 0 }
   0xc   : > { %p615_p4 = por %p605_p1, %p53_p0  ;;  %p319_p5 = scmp.ge.s32.totalorder %s551_s14, 1 }
   0xd   : > { %p620_p6 = por %p111_p3, %p53_p0  ;;  %p118_p7 = scmp.lt.s32.totalorder %s551_s14, 3 }
   0xe   : > { %s797_s19 = scalar_select %p615_p4, 1, 0 }
   0xf   : > { %s798_s20 = scalar_select %p620_p6, 1, 0 }
  0x10   : > { %p625_p8 = pnand %p319_p5, %p118_p7  ;;  %s553_s22 = smov [#allocation5]  }
  0x11   : > { %s134_s23 = sshll.u32 %s553_s22, 4  ;;  %s28_s25 = sadd.s32 1, %s547_s13  ;;  %s135_s23 = int_to_ptr.vmem [resolvable:$true] %s134_s23 }
  0x12   : > { %s799_s21 = scalar_select %p625_p8, 1, 0 }
  0x13   : > { %p342_p10 = pneg %p625_p8  ;;  %s40_s26 = sadd.s32 1, %s539_s11 }
  0x14   : > { %p640_p12 = scmp.ge.s32.totalorder %s28_s25, 2  ;;  %s407_s30 = scalar_lea.hbm %s789_s1, 384 }
  0x15   : > { %p634_p11 = pnand %p342_p10, %p605_p1  ;;  %p408_p13 = scmp.ne.s32.totalorder %s789_s1, %s407_s30 }
  0x16   : > { %s801_s27 = scalar_select %p640_p12, 1, 0 }
  0x17   : > { %p409_p0 = pneg %p634_p11  ;;  %p414_p7 = scmp.lt.u32.totalorder %s407_s30, %s789_s1 }
  0x19   : > { %p410_p3 = pnand %p409_p0, %p408_p13 }
  0x1b   : > { %p411_p5 = pneg %p410_p3 }
  0x1d   : > { %p416_p10 = pnand %p414_p7, %p411_p5 }
  0x1f   : > { %419 = shalt.err (!%p416_p10)
}
  0x20   : > { %s420_s7 = scalar_lea.vmem %s135_s23, 384  ;;  %p428_p4 = scmp.lt.s32.totalorder %s135_s23, %s135_s23 }
  0x21   : > { %p421_p9 = scmp.ne.s32.totalorder %s135_s23, %s420_s7  ;;  %p429_p8 = scmp.lt.s32.totalorder %s420_s7, %s420_s7 }
  0x23   : > { %p423_p6 = pnand %p421_p9, %p409_p0  ;;  %p430_p2 = por %p429_p8, %p428_p4 }
  0x25   : > { %p424_p1 = pneg %p423_p6 }
  0x27   : > { %p431_p12 = pnand %p430_p2, %p424_p1 }
  0x29   : > { %434 = shalt.err (!%p431_p12)
}
  0x2a   : > { %345 = dma.hbm_to_vmem [thread:$0]  (!%p634_p11), %s789_s1, 384, %s135_s23, [#allocation6]  }
  0x2b   : > { %p802_p4 = scmp.ne.s32.totalorder %s801_s27, 0  ;;  %p47_p1 = scmp.ne.s32.totalorder %s539_s11, %s535_s10 }
  0x2c   : > { %p48_p2 = scmp.eq.s32.totalorder %s551_s14, 0  ;;  %p355_p6 = scmp.lt.s32.totalorder %s551_s14, 2 }
  0x2d   : > { %s817_s25 = smov (%p802_p4, %s28_s25), 0  ;;  %p803_p12 = scmp.ne.s32.totalorder %s796_s18, 0 }
  0x2e   : > { %s35_s16 = ssub.s32 %s547_s13, %s817_s25  ;;  %p49_p9 = por %p48_p2, %p47_p1 }
  0x2f   : > { %p38_p8 = scmp.eq.s32.totalorder %s35_s16, 0  ;;  %p672_p13 = por %p803_p12, %p47_p1 }
  0x30   : > { %s145_s24 = sand.u32 1, %s539_s11   ;;  %s323_s27 = sshll.u32 %s547_s13, 7 }
  0x31   : > { %s680_s28 = scalar_select %p38_p8, %s539_s11, %s40_s26  }
  0x32   : > { %s322_s23 = sshll.u32 %s145_s24, 3  ;;  %s686_s3 = scalar_lea.hbm %s788_s0, %s323_s27 }
  0x33   : > { %s149_s18 = scalar_lea.vmem [#allocation2], %s322_s23  ;;  %p690_p11 = pnand %p355_p6, %p49_p9 }
  0x34   : > { %s157_s4 = sshll.u32 %s149_s18, 4  ;;  %s146_s26 = scalar_lea.sflag [#allocation3], %s145_s24  ;;  %s688_s4 = int_to_ptr.vmem [resolvable:$true] %s157_s4 }
  0x35   : > { %s435_s6 = scalar_lea.hbm %s686_s3, 128  ;;  %p437_p3 = pneg %p690_p11 }
  0x36   : > { %p436_p0 = scmp.ne.s32.totalorder %s686_s3, %s435_s6  ;;  %s440_s15 = scalar_lea.hbm %s788_s0, 256 }
  0x37   : > { %p441_p10 = scmp.lt.u32.totalorder %s686_s3, %s788_s0  ;;  %p442_p4 = scmp.lt.u32.totalorder %s440_s15, %s435_s6 }
  0x38   : > { %p438_p5 = pnand %p437_p3, %p436_p0  ;;  %p444_p2 = scmp.lt.u32.totalorder %s435_s6, %s686_s3 }
  0x39   : > { %p443_p1 = por %p442_p4, %p441_p10 }
  0x3a   : > { %p439_p7 = pneg %p438_p5 }
  0x3b   : > { %p445_p6 = por %p444_p2, %p443_p1 }
  0x3d   : > { %p446_p8 = pnand %p445_p6, %p439_p7 }
  0x3f   : > { %449 = shalt.err (!%p446_p8)
}
  0x40   : > { %s450_s24 = scalar_lea.vmem %s688_s4, 128  ;;  %s554_s27 = smov [#allocation2]  }
  0x41   : > { %p451_p9 = scmp.ne.s32.totalorder %s688_s4, %s450_s24  ;;  %s455_s29 = sshll.u32 %s554_s27, 4  ;;  %s456_s29 = int_to_ptr.vmem [resolvable:$false] %s455_s29 }
  0x42   : > { %s457_s30 = scalar_lea.vmem %s456_s29, 256  ;;  %p458_p5 = scmp.lt.s32.totalorder %s688_s4, %s456_s29 }
  0x43   : > { %p453_p12 = pnand %p451_p9, %p437_p3  ;;  %p459_p10 = scmp.lt.s32.totalorder %s457_s30, %s450_s24 }
  0x45   : > { %p454_p0 = pneg %p453_p12  ;;  %p460_p4 = por %p459_p10, %p458_p5 }
  0x47   : > { %p461_p1 = pnand %p460_p4, %p454_p0 }
  0x49   : > { %464 = shalt.err (!%p461_p1)
}
  0x4a   : > { %349 = dma.hbm_to_vmem [thread:$0]  (!%p690_p11), %s686_s3, 128, %s688_s4, %s146_s26  }
  0x4b   : > { %p806_p7 = scmp.ne.s32.totalorder %s799_s21, 0 }
  0x4c   : > { %s722_s18 = sand.u32 (!%p806_p7), 1, %s535_s10   ;;  %p807_p3 = scmp.ne.s32.totalorder (!%p806_p7), %s797_s19, 0 }
  0x4d   : > { %166 = sbr.rel (%p806_p7) target bundleno = 113 (0x71), region = 28  ;;  %s325_s6 = sshll.u32 (!%p806_p7), %s722_s18, 3 }
  0x4e   : > { %s169_s7 = scalar_lea.sflag (!%p806_p7), [#allocation3], %s722_s18  ;;  %s172_s8 = scalar_lea.vmem (!%p806_p7), [#allocation2], %s325_s6 }
  0x54   : > { %518 = dma.done.wait (%p807_p3), %s169_s7, 128  }
  0x55   : > { %520 = vsyncadd (%p807_p3), %s169_s7, 4294967168  ;;  %p808_p2 = scmp.ne.s32.totalorder %s795_s17, 0 }
  0x57   : > { %522 = dma.done.wait (%p808_p2), [#allocation6], 384  }
  0x58   : > { %524 = vsyncadd (%p808_p2), [#allocation6], 4294966912  ;;  %s327_s21 = sshll.u32 %s722_s18, 5  ;;  %s333_s5 = sshll.u32 %s543_s12, 9  ;;  %vm204_vm0 = vcmask 130048   ;;  %v197_v0 = vld [vmem:[%s172_s8] sm:$0xff] }
  0x59   : > { %s196_s3 = scalar_lea.vmem [#allocation7], %s327_s21  ;;  %v199_v1 = vld [vmem:[#allocation5] sm:$0xff]  ;;  %v200_v2 = vld [vmem:[#allocation5 + $0x8] sm:$0xff]  ;;  %s741_s17 = scalar_lea.hbm %s790_s2, %s333_s5  ;;  %v201_v3 = vld [vmem:[#allocation5 + $0x10] sm:$0xff] }
  0x5a   : > { %s223_s4 = sshll.u32 %s196_s3, 4  ;;  %198 = vst [vmem:[%s196_s3] sm:$0xff] %v197_v0  ;;  %202 = vst [vmem:[%s196_s3 + $0x8] sm:$0xff] %v199_v1  ;;  %s207_s12 = scalar_lea.sflag [#allocation4], %s722_s18  ;;  %s736_s4 = int_to_ptr.vmem [resolvable:$true] %s223_s4 }
  0x5b   : > { %203 = vst [vmem:[%s196_s3 + $0x10] sm:$0xff] %v200_v2  ;;  %205 = vst.msk [vmem:[%s196_s3 + $0x18] sm:$0xff] %vm204_vm0, %v201_v3  ;;  %s465_s15 = scalar_lea.vmem %s736_s4, 512  ;;  %s555_s16 = smov [#allocation7]  }
  0x5c   : > { %p466_p11 = scmp.ne.s32.totalorder %s736_s4, %s465_s15  ;;  %s469_s23 = sshll.u32 %s555_s16, 4  ;;  %s470_s23 = int_to_ptr.vmem [resolvable:$false] %s469_s23 }
  0x5d   : > { %s471_s24 = scalar_lea.vmem %s470_s23, 1024  ;;  %p472_p9 = scmp.lt.s32.totalorder %s736_s4, %s470_s23 }
  0x5e   : > { %p467_p6 = pnand %p466_p11, %p672_p13  ;;  %p473_p12 = scmp.lt.s32.totalorder %s471_s24, %s465_s15 }
  0x60   : > { %p468_p8 = pneg %p467_p6  ;;  %p474_p0 = por %p473_p12, %p472_p9 }
  0x62   : > { %p475_p5 = pnand %p474_p0, %p468_p8 }
  0x64   : > { %478 = shalt.err (!%p475_p5)
}
  0x65   : > { %s479_s27 = scalar_lea.hbm %s741_s17, 512  ;;  %s483_s18 = scalar_lea.hbm %s790_s2, 1024 }
  0x66   : > { %p480_p10 = scmp.ne.s32.totalorder %s741_s17, %s479_s27  ;;  %p484_p7 = scmp.lt.u32.totalorder %s741_s17, %s790_s2 }
  0x67   : > { %p485_p3 = scmp.lt.u32.totalorder %s483_s18, %s479_s27  ;;  %p487_p11 = scmp.lt.u32.totalorder %s479_s27, %s741_s17 }
  0x68   : > { %p481_p4 = pnand %p480_p10, %p672_p13 }
  0x69   : > { %p486_p2 = por %p485_p3, %p484_p7 }
  0x6a   : > { %p482_p1 = pneg %p481_p4 }
  0x6b   : > { %p488_p6 = por %p487_p11, %p486_p2 }
  0x6d   : > { %p489_p8 = pnand %p488_p6, %p482_p1 }
  0x6f   : > { %492 = shalt.err (!%p489_p8)
}
  0x70   : > { %340 = dma.vmem_to_hbm [thread:$0]  (%p672_p13), %s736_s4, 512, %s741_s17, %s207_s12  }
  0x71 PF: > { %s235_s8 = sand.u32 1, %s531_s9   ;;  %p809_p9 = scmp.ne.s32.totalorder %s798_s20, 0 }
  0x72   : > { %p810_p12 = scmp.ge.s32.totalorder %s551_s14, 2  ;;  %s236_s21 = scalar_lea.sflag [#allocation4], %s235_s8 }
  0x74   : > { %p351_p0 = pnand %p810_p12, %p809_p9 }
  0x76   : > { %526 = dma.done.wait (!%p351_p0), %s236_s21, 512  }
  0x77   : > { %528 = vsyncadd (!%p351_p0), %s236_s21, 4294966784  ;;  %s19_s14 = sadd.s32 1, %s551_s14   ;;  %s811_s9 = smov %s535_s10 }
  0x78   : > { %p16_p5 = scmp.ge.s32.totalorder %s19_s14, 4   ;;  %s812_s10 = smov %s539_s11 }
  0x79   : > { %s813_s11 = smov %s680_s28  ;;  %s814_s12 = smov %s547_s13 }
  0x7a   : > { %s815_s13 = smov %s817_s25  ;;  %18 = sbr.rel (!%p16_p5) target bundleno = 7 (0x7), region = 78 }
  0x81   :  { %241 = vsyncpa [#allocation3], 1 }
  0x82   :  { %243 = vsyncpa [#allocation3 + $0x1], 1 }
  0x83   :  { %244 = vsyncpa [#allocation6], 1 }
  0x84   :  { %245 = vsyncpa [#allocation4], 1 }
  0x85   :  { %247 = vsyncpa [#allocation4 + $0x1], 1 }

</bundles_post_ra>
